<compile_context>
chip_gen: v5e
topology: v5e:2x2
jax: 0.10.0
libtpu: 0.0.40
codegen_flags: <defaults>
</compile_context>

<pallas_src>
import jax
import jax.numpy as jnp
from jax.experimental import pallas as pl
from jax.experimental.pallas import tpu as pltpu


def _round_up(x, m):
    return ((x + m - 1) // m) * m


def _conv_bn_relu_kernel(x_ref, w_ref, scale_ref, shift_ref, o_ref):
    # Single big-K MXU contraction, f32 accumulation.
    acc = jnp.dot(x_ref[...], w_ref[...], preferred_element_type=jnp.float32)
    # Folded BatchNorm (per-channel scale/shift broadcast over rows) + ReLU.
    y = acc * scale_ref[...] + shift_ref[...]
    o_ref[...] = jnp.maximum(y, 0.0).astype(o_ref.dtype)


@jax.jit
def downsample_forward(x, weight, gamma, beta, running_mean, running_var, eps=1e-5):
    """x: (N, Cin, H, W) NCHW f32; weight: (Cout, Cin, 3, 3) OIHW (PyTorch layout)."""
    n, cin, h, w_dim = x.shape
    cout = weight.shape[0]
    ho = (h + 2 - 3) // 2 + 1          # stride=2, pad=1, k=3
    wo = (w_dim + 2 - 3) // 2 + 1

    # ---- wrapper preprocessing (fused by XLA under jit) ----------------------
    # NCHW -> NHWC, pad spatially by 1, im2col the 9 taps of the 3x3 stride-2
    # window (each tap is a static strided slice).
    x_nhwc = jnp.transpose(x, (0, 2, 3, 1))
    x_pad = jnp.pad(x_nhwc, ((0, 0), (1, 1), (1, 1), (0, 0)))
    taps = [x_pad[:, kh:kh + 2 * ho - 1:2, kw:kw + 2 * wo - 1:2, :]
            for kh in range(3) for kw in range(3)]
    patches = jnp.stack(taps, axis=3).reshape(n * ho * wo, 9 * cin)   # (M, 9*Cin)

    # OIHW -> (KH*KW*Cin, Cout), matching the (kh, kw, cin) order of `patches`.
    w_mat = jnp.transpose(weight, (2, 3, 1, 0)).reshape(9 * cin, cout)

    # Fold BatchNorm into per-channel scale/shift (f32).
    scale = (gamma * jax.lax.rsqrt(running_var + eps)).astype(jnp.float32)
    shift = (beta - running_mean * scale).astype(jnp.float32)

    # ---- tile selection (static python ints) ---------------------------------
    m = n * ho * wo
    k = 9 * cin
    m_pad = _round_up(m, 8)                 # sublane-aligned only; partial last M tile
    k_pad = _round_up(k, 128)               # lane-aligned K
    c_pad = _round_up(cout, 128)            # lane-dense output channels

    budget = 44 * 1024 * 1024               # safe on v5e/v6e (128 MiB) and v7x (64 MiB)
    w_panel = 2 * k_pad * c_pad * 2         # weight panel, bf16, 2x buffered
    if w_panel <= budget // 2:
        tn = c_pad                          # full Cout width: activations streamed once
    elif c_pad % 256 == 0:
        tn = 256                            # fill the 256-wide MXU (v6e/v7x)
    else:
        tn = 128
    w_panel = 2 * k_pad * tn * 2
    per_row = 2 * (k_pad + tn) * 2          # double-buffered bf16 act row + out row
    tm_cap = max(8, (budget - w_panel) // per_row // 8 * 8)
    tm = max(8, min(1024, tm_cap, m_pad))

    grid = (pl.cdiv(m_pad, tm), c_pad // tn)   # M leading -> megacore shards M (v7x)

    # ---- pad operands (single fused jnp.pad each) -----------------------------
    patches_p = jnp.pad(patches.astype(jnp.bfloat16), ((0, m_pad - m), (0, k_pad - k)))
    w_p = jnp.pad(w_mat.astype(jnp.bfloat16), ((0, k_pad - k), (0, c_pad - cout)))
    scale_p = jnp.pad(scale.reshape(1, cout), ((0, 0), (0, c_pad - cout)))
    shift_p = jnp.pad(shift.reshape(1, cout), ((0, 0), (0, c_pad - cout)))

    vmem_bytes = w_panel + tm * per_row + 4 * c_pad * 4 + (1 << 20)
    vmem_limit = max(32 * 1024 * 1024, min(48 * 1024 * 1024, int(vmem_bytes)))

    cost = pl.CostEstimate(
        flops=2 * m_pad * k_pad * c_pad,
        transcendentals=0,
        bytes_accessed=(m_pad * k_pad * 2 + k_pad * c_pad * 2
                        + m_pad * c_pad * 2 + 2 * c_pad * 4),
    )

    out_flat = pl.pallas_call(
        _conv_bn_relu_kernel,
        out_shape=jax.ShapeDtypeStruct((m_pad, c_pad), jnp.bfloat16),
        grid_spec=pltpu.PrefetchScalarGridSpec(
            num_scalar_prefetch=0,
            grid=grid,
            in_specs=[
                pl.BlockSpec((tm, k_pad), lambda i, j: (i, 0)),   # activations
                pl.BlockSpec((k_pad, tn), lambda i, j: (0, j)),   # weight (resident when tn==c_pad)
                pl.BlockSpec((1, tn), lambda i, j: (0, j)),       # BN scale
                pl.BlockSpec((1, tn), lambda i, j: (0, j)),       # BN shift
            ],
            out_specs=pl.BlockSpec((tm, tn), lambda i, j: (i, j)),
        ),
        compiler_params=pltpu.CompilerParams(
            dimension_semantics=("parallel", "parallel"),
            vmem_limit_bytes=vmem_limit,
        ),
        cost_estimate=cost,
    )(patches_p, w_p, scale_p, shift_p)

    # ---- postprocess: unpad, back to NCHW, return f32 (module semantics) ------
    out = out_flat[:m, :cout].reshape(n, ho, wo, cout)
    return jnp.transpose(out, (0, 3, 1, 2)).astype(jnp.float32)


if __name__ == "__main__":
    key = jax.random.PRNGKey(0)
    n, c, h, w = 2, 4, 16, 16
    k1, k2, k3, k4, k5, k6 = jax.random.split(key, 6)

    x = jax.random.normal(k1, (n, c, h, w), jnp.float32)
    conv_w = jax.random.normal(k2, (c, c, 3, 3), jnp.float32) * 0.2
    gamma = 1.0 + 0.1 * jax.random.normal(k3, (c,), jnp.float32)
    beta = 0.1 * jax.random.normal(k4, (c,), jnp.float32)
    running_mean = 0.1 * jax.random.normal(k5, (c,), jnp.float32)
    running_var = 0.5 + jax.random.uniform(k6, (c,), jnp.float32)
    eps = 1e-5

    out = downsample_forward(x, conv_w, gamma, beta, running_mean, running_var, eps)
    out = jax.block_until_ready(out)

    # Pure-JAX f32 reference: Conv2d(3x3, stride=2, pad=1, no bias) -> BN (eval) -> ReLU.
    conv = jax.lax.conv_general_dilated(
        x, conv_w, window_strides=(2, 2), padding=((1, 1), (1, 1)),
        dimension_numbers=("NCHW", "OIHW", "NCHW"))
    ref_scale = gamma / jnp.sqrt(running_var + eps)
    ref_shift = beta - running_mean * ref_scale
    ref = jnp.maximum(
        conv * ref_scale[None, :, None, None] + ref_shift[None, :, None, None], 0.0)

    assert out.shape == ref.shape, (out.shape, ref.shape)
    # bf16 MXU inputs + bf16 kernel output vs f32 reference -> relaxed tolerance.
    err = float(jnp.max(jnp.abs(out - ref)))
    assert err < 1e-1, f"max abs error too large: {err}"
    print("KERNEL_OK")
</pallas_src>

<mosaic_0001>
module attributes {stable_mosaic.version = 11 : i64} {
  func.func @_conv_bn_relu_kernel(%arg0: i32, %arg1: i32, %arg2: memref<128x128xbf16, #tpu.memory_space<vmem>>, %arg3: memref<128x128xbf16, #tpu.memory_space<vmem>>, %arg4: memref<1x128xf32, #tpu.memory_space<vmem>>, %arg5: memref<1x128xf32, #tpu.memory_space<vmem>>, %arg6: memref<128x128xbf16, #tpu.memory_space<vmem>>) attributes {dimension_semantics = [#tpu.dimension_semantics<parallel>, #tpu.dimension_semantics<parallel>], iteration_bounds = array<i64: 1, 1>, scalar_prefetch = 0 : i64, scratch_operands = 0 : i64, tpu.core_type = #tpu.core_type<tc>, window_params = [{transform_indices = @transform_0, window_bounds = array<i64: 128, 128>}, {transform_indices = @transform_1, window_bounds = array<i64: 128, 128>}, {transform_indices = @transform_2, window_bounds = array<i64: 1, 128>}, {transform_indices = @transform_3, window_bounds = array<i64: 1, 128>}, {transform_indices = @transform_4, window_bounds = array<i64: 128, 128>}]} {
    %c0 = arith.constant 0 : index
    %c0_0 = arith.constant 0 : index
    %0 = vector.load %arg2[%c0, %c0_0] : memref<128x128xbf16, #tpu.memory_space<vmem>>, vector<128x128xbf16>
    %c0_1 = arith.constant 0 : index
    %c0_2 = arith.constant 0 : index
    %1 = vector.load %arg3[%c0_1, %c0_2] : memref<128x128xbf16, #tpu.memory_space<vmem>>, vector<128x128xbf16>
    %cst = arith.constant dense<0.000000e+00> : vector<128x128xf32>
    %2 = tpu.matmul %0, %1, %cst {dimension_numbers = #tpu.dot_dimension_numbers<[1], [0], [0], [1], [0, 0, 1, 1], [], []>} : vector<128x128xbf16>, vector<128x128xbf16>, vector<128x128xf32> -> vector<128x128xf32>
    %c0_3 = arith.constant 0 : index
    %c0_4 = arith.constant 0 : index
    %3 = vector.load %arg4[%c0_3, %c0_4] : memref<1x128xf32, #tpu.memory_space<vmem>>, vector<1x128xf32>
    %4 = vector.broadcast %3 : vector<1x128xf32> to vector<128x128xf32>
    %5 = arith.mulf %2, %4 : vector<128x128xf32>
    %c0_5 = arith.constant 0 : index
    %c0_6 = arith.constant 0 : index
    %6 = vector.load %arg5[%c0_5, %c0_6] : memref<1x128xf32, #tpu.memory_space<vmem>>, vector<1x128xf32>
    %7 = vector.broadcast %6 : vector<1x128xf32> to vector<128x128xf32>
    %8 = arith.addf %5, %7 : vector<128x128xf32>
    %cst_7 = arith.constant 0.000000e+00 : f32
    %9 = vector.broadcast %cst_7 : f32 to vector<128x128xf32>
    %10 = arith.maximumf %8, %9 : vector<128x128xf32>
    %11 = arith.truncf %10 : vector<128x128xf32> to vector<128x128xbf16>
    %c0_8 = arith.constant 0 : index
    %c0_9 = arith.constant 0 : index
    %12 = vector.load %arg6[%c0_8, %c0_9] : memref<128x128xbf16, #tpu.memory_space<vmem>>, vector<128x128xbf16>
    tpu.vector_store %arg6[%c0_8, %c0_9], %11 {strides = array<i32>} : memref<128x128xbf16, #tpu.memory_space<vmem>>, vector<128x128xbf16>,
    return
  }
  func.func @transform_0(%arg0: i32, %arg1: i32) -> (i32, i32) {
    %c0_i32 = arith.constant 0 : i32
    %c0_i32_0 = arith.constant 0 : i32
    return %arg0, %c0_i32 : i32, i32
  }
  func.func @transform_1(%arg0: i32, %arg1: i32) -> (i32, i32) {
    %c0_i32 = arith.constant 0 : i32
    %c0_i32_0 = arith.constant 0 : i32
    return %c0_i32, %arg1 : i32, i32
  }
  func.func @transform_2(%arg0: i32, %arg1: i32) -> (i32, i32) {
    %c0_i32 = arith.constant 0 : i32
    %c0_i32_0 = arith.constant 0 : i32
    return %c0_i32, %arg1 : i32, i32
  }
  func.func @transform_3(%arg0: i32, %arg1: i32) -> (i32, i32) {
    %c0_i32 = arith.constant 0 : i32
    %c0_i32_0 = arith.constant 0 : i32
    return %c0_i32, %arg1 : i32, i32
  }
  func.func @transform_4(%arg0: i32, %arg1: i32) -> (i32, i32) {
    %c0_i32 = arith.constant 0 : i32
    return %arg0, %arg1 : i32, i32
  }
}

</mosaic_0001>

<bundles_post_ra>
// kernel: downsample_forward.1
= control target key start
LH: loop header
LB: loop body
LE: loop exit
PB: predicated region body
PF: predicated region fallthrough
CT: control target
= control target key end

     0   :  { %s578_s1 = inlined_call_operand.vmem [shape: bf16[128,128], index: 1, kind: input, shape index: {}]   ;;  %s579_s2 = inlined_call_operand.vmem [shape: f32[1,128], index: 2, kind: input, shape index: {}]   ;;  %s580_s3 = inlined_call_operand.vmem [shape: f32[1,128], index: 3, kind: input, shape index: {}]   ;;  %s581_s0 = inlined_call_operand.vmem [shape: bf16[128,128], index: 0, kind: input, shape index: {}]   ;;  %s582_s4 = inlined_call_operand.vmem [shape: bf16[128,128], index: 4, kind: output, shape index: {}]  }
   0x1   :  { %v365_v0 = vld [vmem:[%s578_s1 + $0x38] sm:$0xff]  ;;  %v364_v1 = vld [vmem:[%s578_s1 + $0x30] sm:$0xff]  ;;  %v363_v2 = vld [vmem:[%s578_s1 + $0x28] sm:$0xff] }
   0x2   :  { %145 = vmatpush.bf16.msra.mxu0 %v365_v0  ;;  %413 = vmatpush.bf16.msra.mxu1 %v365_v0  ;;  %v362_v3 = vld [vmem:[%s578_s1 + $0x20] sm:$0xff]  ;;  %v361_v4 = vld [vmem:[%s578_s1 + $0x18] sm:$0xff]  ;;  %v360_v5 = vld [vmem:[%s578_s1 + $0x10] sm:$0xff] }
   0x3   :  { %414 = vmatpush.bf16.msra.mxu2 %v365_v0  ;;  %415 = vmatpush.bf16.msra.mxu3 %v365_v0  ;;  %v359_v6 = vld [vmem:[%s578_s1 + $0x8] sm:$0xff]  ;;  %v358_v7 = vld [vmem:[%s578_s1] sm:$0xff]  ;;  %v352_v9 = vld [vmem:[%s581_s0 + $0x10] sm:$0xff] }
   0x4   :  { %v350_v8 = vld [vmem:[%s581_s0] sm:$0xff]  ;;  %v356_v11 = vld [vmem:[%s581_s0 + $0x30] sm:$0xff]  ;;  %v351_v12 = vld [vmem:[%s581_s0 + $0x8] sm:$0xff] }
   0x5   :  { %v354_v10 = vld [vmem:[%s581_s0 + $0x20] sm:$0xff]  ;;  %v353_v13 = vld [vmem:[%s581_s0 + $0x18] sm:$0xff]  ;;  %v355_v14 = vld [vmem:[%s581_s0 + $0x28] sm:$0xff] }
   0x6   :  { %146 = vmatpush.bf16.msra.mxu0 %v364_v1  ;;  %416 = vmatpush.bf16.msra.mxu1 %v364_v1  ;;  %v357_v15 = vld [vmem:[%s581_s0 + $0x38] sm:$0xff]  ;;  %v515_v18 = vld [vmem:[%s579_s2] ss:$0 sm:$0xff] }
   0x7   :  { %417 = vmatpush.bf16.msra.mxu2 %v364_v1  ;;  %418 = vmatpush.bf16.msra.mxu3 %v364_v1  ;;  %v521_v20 = vld [vmem:[%s580_s3] ss:$0 sm:$0xff] }
   0xa   :  { %147 = vmatpush.bf16.msra.mxu0 %v363_v2  ;;  %419 = vmatpush.bf16.msra.mxu1 %v363_v2 }
   0xb   :  { %420 = vmatpush.bf16.msra.mxu2 %v363_v2  ;;  %421 = vmatpush.bf16.msra.mxu3 %v363_v2 }
   0xe   :  { %148 = vmatpush.bf16.msra.mxu0 %v362_v3  ;;  %422 = vmatpush.bf16.msra.mxu1 %v362_v3 }
   0xf   :  { %423 = vmatpush.bf16.msra.mxu2 %v362_v3  ;;  %424 = vmatpush.bf16.msra.mxu3 %v362_v3 }
  0x12   :  { %149 = vmatpush.bf16.msra.mxu0 %v361_v4  ;;  %425 = vmatpush.bf16.msra.mxu1 %v361_v4 }
  0x13   :  { %426 = vmatpush.bf16.msra.mxu2 %v361_v4  ;;  %427 = vmatpush.bf16.msra.mxu3 %v361_v4 }
  0x16   :  { %150 = vmatpush.bf16.msra.mxu0 %v360_v5  ;;  %428 = vmatpush.bf16.msra.mxu1 %v360_v5 }
  0x17   :  { %429 = vmatpush.bf16.msra.mxu2 %v360_v5  ;;  %430 = vmatpush.bf16.msra.mxu3 %v360_v5 }
  0x1a   :  { %151 = vmatpush.bf16.msra.mxu0 %v359_v6  ;;  %431 = vmatpush.bf16.msra.mxu1 %v359_v6 }
  0x1b   :  { %432 = vmatpush.bf16.msra.mxu2 %v359_v6  ;;  %433 = vmatpush.bf16.msra.mxu3 %v359_v6 }
  0x1e   :  { %152 = vmatpush.bf16.msra.mxu0 %v358_v7  ;;  %434 = vmatpush.bf16.msra.mxu1 %v358_v7 }
  0x1f   :  { %435 = vmatpush.bf16.msra.mxu2 %v358_v7  ;;  %436 = vmatpush.bf16.msra.mxu3 %v358_v7 }
  0x21   :  { %153 = vmatmul.bf16.vlgmr.msra.gmra.mxu0 %v350_v8  ;;  %163 = vmatmul.bf16.vlgmr.msra.gmra.mxu1 %v352_v9 }
  0x22   :  { %173 = vmatmul.bf16.vlgmr.msra.gmra.mxu2 %v354_v10  ;;  %183 = vmatmul.bf16.vlgmr.msra.gmra.mxu3 %v356_v11 }
  0x31   :  { %158 = vmatmul.bf16.gmra.mxu0 %v351_v12  ;;  %168 = vmatmul.bf16.gmra.mxu1 %v353_v13 }
  0x32   :  { %178 = vmatmul.bf16.gmra.mxu2 %v355_v14  ;;  %188 = vmatmul.bf16.gmra.mxu3 %v357_v15 }
  0x9e   :  { %v154_v16 = vpop.f32.mrf.mxu0  ;;  %v164_v17 = vpop.f32.mrf.mxu1 }
  0x9f   :  { %v198_v19 = vmul.f32 %v515_v18, %v154_v16  ;;  %v202_v21 = vmul.f32 %v515_v18, %v164_v17 }
  0xa1   :  { %v218_v26 = vadd.f32 %v521_v20, %v198_v19  ;;  %v222_v27 = vadd.f32 %v521_v20, %v202_v21 }
  0xa3   :  { %v234_v34 = vmax.f32 %v218_v26, 0.0  ;;  %v238_v35 = vmax.f32 %v222_v27, 0.0 }
  0xa5   :  { %v174_v22 = vpop.f32.mrf.mxu2  ;;  %v184_v23 = vpop.f32.mrf.mxu3 }
  0xa6   :  { %v156_v24 = vpop.f32.mrf.mxu0  ;;  %v166_v25 = vpop.f32.mrf.mxu1  ;;  %v206_v32 = vmul.f32 %v515_v18, %v174_v22  ;;  %v210_v33 = vmul.f32 %v515_v18, %v184_v23 }
  0xa7   :  { %v199_v28 = vmul.f32 %v515_v18, %v156_v24  ;;  %v203_v29 = vmul.f32 %v515_v18, %v166_v25 }
  0xa8   :  { %v226_v42 = vadd.f32 %v521_v20, %v206_v32  ;;  %v230_v43 = vadd.f32 %v521_v20, %v210_v33 }
  0xa9   :  { %v219_v30 = vadd.f32 %v521_v20, %v199_v28  ;;  %v223_v31 = vadd.f32 %v521_v20, %v203_v29 }
  0xaa   :  { %v242_v50 = vmax.f32 %v226_v42, 0.0  ;;  %v246_v51 = vmax.f32 %v230_v43, 0.0 }
  0xab   :  { %v235_v36 = vmax.f32 %v219_v30, 0.0  ;;  %v239_v37 = vmax.f32 %v223_v31, 0.0 }
  0xad   :  { %v369_v38 = vpack.c.bf16 %v235_v36, %v234_v34  ;;  %v379_v39 = vpack.c.bf16 %v239_v37, %v238_v35  ;;  %v176_v40 = vpop.f32.mrf.mxu2  ;;  %v186_v41 = vpop.f32.mrf.mxu3 }
  0xae   :  { %v207_v44 = vmul.f32 %v515_v18, %v176_v40  ;;  %v211_v45 = vmul.f32 %v515_v18, %v186_v41  ;;  %v159_v46 = vpop.f32.mrf.mxu0  ;;  %v169_v47 = vpop.f32.mrf.mxu1 }
  0xaf   :  { %370 = vst [vmem:[%s582_s4] sm:$0xff] %v369_v38   ;;  %v200_v54 = vmul.f32 %v515_v18, %v159_v46  ;;  %v204_v55 = vmul.f32 %v515_v18, %v169_v47 }
  0xb0   :  { %407 = vst [vmem:[%s582_s4 + $0x10] sm:$0xff] %v379_v39   ;;  %v227_v48 = vadd.f32 %v521_v20, %v207_v44  ;;  %v231_v49 = vadd.f32 %v521_v20, %v211_v45 }
  0xb1   :  { %v220_v62 = vadd.f32 %v521_v20, %v200_v54  ;;  %v224_v63 = vadd.f32 %v521_v20, %v204_v55 }
  0xb2   :  { %v243_v52 = vmax.f32 %v227_v48, 0.0  ;;  %v247_v53 = vmax.f32 %v231_v49, 0.0 }
  0xb3   :  { %v236_v6 = vmax.f32 %v220_v62, 0.0  ;;  %v240_v7 = vmax.f32 %v224_v63, 0.0 }
  0xb4   :  { %v389_v56 = vpack.c.bf16 %v243_v52, %v242_v50  ;;  %v399_v57 = vpack.c.bf16 %v247_v53, %v246_v51 }
  0xb5   :  { %v179_v58 = vpop.f32.mrf.mxu2  ;;  %v189_v59 = vpop.f32.mrf.mxu3 }
  0xb6   :  { %409 = vst [vmem:[%s582_s4 + $0x20] sm:$0xff] %v389_v56   ;;  %v161_v60 = vpop.f32.mrf.mxu0  ;;  %v171_v61 = vpop.f32.mrf.mxu1  ;;  %v208_v4 = vmul.f32 %v515_v18, %v179_v58  ;;  %v212_v5 = vmul.f32 %v515_v18, %v189_v59 }
  0xb7   :  { %411 = vst [vmem:[%s582_s4 + $0x30] sm:$0xff] %v399_v57   ;;  %v201_v0 = vmul.f32 %v515_v18, %v161_v60  ;;  %v205_v1 = vmul.f32 %v515_v18, %v171_v61 }
  0xb8   :  { %v228_v14 = vadd.f32 %v521_v20, %v208_v4  ;;  %v232_v15 = vadd.f32 %v521_v20, %v212_v5 }
  0xb9   :  { %v221_v2 = vadd.f32 %v521_v20, %v201_v0  ;;  %v225_v3 = vadd.f32 %v521_v20, %v205_v1 }
  0xba   :  { %v244_v22 = vmax.f32 %v228_v14, 0.0  ;;  %v248_v23 = vmax.f32 %v232_v15, 0.0 }
  0xbb   :  { %v237_v8 = vmax.f32 %v221_v2, 0.0  ;;  %v241_v9 = vmax.f32 %v225_v3, 0.0 }
  0xbd   :  { %v374_v10 = vpack.c.bf16 %v237_v8, %v236_v6  ;;  %v384_v11 = vpack.c.bf16 %v241_v9, %v240_v7  ;;  %v181_v12 = vpop.f32.mrf.mxu2  ;;  %v191_v13 = vpop.f32.mrf.mxu3 }
  0xbe   :  { %v209_v16 = vmul.f32 %v515_v18, %v181_v12  ;;  %v213_v17 = vmul.f32 %v515_v18, %v191_v13 }
  0xbf   :  { %406 = vst [vmem:[%s582_s4 + $0x8] sm:$0xff] %v374_v10  }
  0xc0   :  { %408 = vst [vmem:[%s582_s4 + $0x18] sm:$0xff] %v384_v11   ;;  %v229_v19 = vadd.f32 %v521_v20, %v209_v16  ;;  %v233_v21 = vadd.f32 %v521_v20, %v213_v17 }
  0xc2   :  { %v245_v24 = vmax.f32 %v229_v19, 0.0  ;;  %v249_v25 = vmax.f32 %v233_v21, 0.0 }
  0xc4   :  { %v394_v26 = vpack.c.bf16 %v245_v24, %v244_v22  ;;  %v404_v27 = vpack.c.bf16 %v249_v25, %v248_v23 }
  0xc6   :  { %410 = vst [vmem:[%s582_s4 + $0x28] sm:$0xff] %v394_v26  }
  0xc7   :  { %412 = vst [vmem:[%s582_s4 + $0x38] sm:$0xff] %v404_v27  }

</bundles_post_ra>
